<compile_context>
chip_gen: v7x
topology: tpu7x:2x2x1
jax: 0.10.0
libtpu: 0.0.40
codegen_flags: <defaults>
</compile_context>

<pallas_src>
import jax
import jax.numpy as jnp
from jax.experimental import pallas as pl
from jax.experimental.pallas import tpu as pltpu

INPUT_SIZE = 784
HIDDEN = 50
NUM_CLASSES = 10

H_PAD = 128          # hidden dim padded to one lane width (zero padding, exact math)

TM_MAX = 1024        # batch-tile cap (measured sweet spot for mem-bound tiles)
MIN_STEPS = 4        # for large batches keep >=4 grid steps (v7x 2 TCs + pipelining)
SMALL_BATCH = 512    # below this, one grid step (per-step overhead dominates)


def _round_up(x, m):
    return (x + m - 1) // m * m


def _cdiv(a, b):
    return (a + b - 1) // b


def _pick_tile(batch):
    """Choose (tm, padded_batch): tm multiple of 8, padding < 1 tile."""
    batch8 = _round_up(batch, 8)
    if batch8 <= SMALL_BATCH:
        tm = batch8                      # tiny batch: single grid step is fastest
    else:
        steps = max(MIN_STEPS, _cdiv(batch8, TM_MAX))
        tm = min(TM_MAX, _round_up(_cdiv(batch8, steps), 8))
    batch_p = _round_up(batch8, tm)
    return tm, batch_p


def mlp_kernel(x_ref, w1_ref, b1_ref, w2_ref, b2_ref, o_ref):
    # x arrives as f32 straight from HBM; cast to bf16 on the VPU (huge slack
    # here) so both matmuls run on the MXU in bf16 with f32 accumulation.
    x = x_ref[...].astype(jnp.bfloat16)
    # fc1: x @ W1 + b1, ReLU (bias add / ReLU in f32).
    h = jnp.dot(x, w1_ref[...], preferred_element_type=jnp.float32)
    h = jnp.maximum(h + b1_ref[...], 0.0)
    # fc2: h @ W2 + b2 — true 10-wide output block (lane-masked store, but the
    # kernel is HBM-bound so fewer writeback bytes win).
    out = jnp.dot(h.astype(jnp.bfloat16), w2_ref[...],
                  preferred_element_type=jnp.float32)
    o_ref[...] = (out + b2_ref[...]).astype(o_ref.dtype)


def prepare_params(w1, b1, w2, b2):
    """One-time parameter prep (do at load/init, NOT per forward call):
    pad the hidden dim to 128 lanes and cast matmul operands to bf16.
    Zero padding keeps the math exact; biases stay f32."""
    b1 = jnp.reshape(b1, (1, -1)).astype(jnp.float32)
    b2 = jnp.reshape(b2, (1, -1)).astype(jnp.float32)
    w1_p = jnp.pad(w1, ((0, 0), (0, H_PAD - HIDDEN))).astype(jnp.bfloat16)
    b1_p = jnp.pad(b1, ((0, 0), (0, H_PAD - HIDDEN)))
    w2_p = jnp.pad(w2, ((0, H_PAD - HIDDEN), (0, 0))).astype(jnp.bfloat16)
    return w1_p, b1_p, w2_p, b2


def nn_forward(x, w1_p, b1_p, w2_p, b2_p):
    """x: (B, 784) f32 (or bf16); params from prepare_params(). Returns (B, 10) f32."""
    batch = x.shape[0]
    tm, batch_p = _pick_tile(batch)

    # Row-pad only when the batch isn't a tile multiple (padding bounded < tm rows).
    if batch_p != batch:
        x = jnp.pad(x, ((0, batch_p - batch), (0, 0)))

    grid = (batch_p // tm,)

    flops = 2 * batch_p * (INPUT_SIZE * H_PAD + H_PAD * NUM_CLASSES)
    bytes_accessed = (
        batch_p * INPUT_SIZE * x.dtype.itemsize        # x read
        + batch_p * NUM_CLASSES * 4                    # out write
        + w1_p.size * 2 + w2_p.size * 2                # bf16 weights
        + b1_p.size * 4 + b2_p.size * 4)               # f32 biases

    out_p = pl.pallas_call(
        mlp_kernel,
        out_shape=jax.ShapeDtypeStruct((batch_p, NUM_CLASSES), jnp.float32),
        grid=grid,
        in_specs=[
            # x tile: pipelined over the batch grid; full-dim K=784 (no lane pad).
            pl.BlockSpec((tm, INPUT_SIZE), lambda i: (i, 0)),
            # Weights / biases: resident in VMEM across all grid steps.
            pl.BlockSpec((INPUT_SIZE, H_PAD), lambda i: (0, 0)),
            pl.BlockSpec((1, H_PAD), lambda i: (0, 0)),
            pl.BlockSpec((H_PAD, NUM_CLASSES), lambda i: (0, 0)),
            pl.BlockSpec((1, NUM_CLASSES), lambda i: (0, 0)),
        ],
        out_specs=pl.BlockSpec((tm, NUM_CLASSES), lambda i: (i, 0)),
        compiler_params=pltpu.CompilerParams(
            dimension_semantics=("parallel",),
            vmem_limit_bytes=32 * 1024 * 1024,
        ),
        cost_estimate=pl.CostEstimate(
            flops=flops, transcendentals=0, bytes_accessed=bytes_accessed),
    )(x, w1_p, b1_p, w2_p, b2_p)

    # NOTE: padded batch rows (if any) hold garbage — never reduce over out_p directly.
    return out_p if batch_p == batch else out_p[:batch]


def init_params(key):
    # Deterministic init mimicking nn.Linear's uniform(-1/sqrt(fan_in), 1/sqrt(fan_in)).
    k1, k2, k3, k4 = jax.random.split(key, 4)
    bound1 = 1.0 / (INPUT_SIZE ** 0.5)
    bound2 = 1.0 / (HIDDEN ** 0.5)
    w1 = jax.random.uniform(k1, (INPUT_SIZE, HIDDEN), jnp.float32, -bound1, bound1)
    b1 = jax.random.uniform(k2, (1, HIDDEN), jnp.float32, -bound1, bound1)
    w2 = jax.random.uniform(k3, (HIDDEN, NUM_CLASSES), jnp.float32, -bound2, bound2)
    b2 = jax.random.uniform(k4, (1, NUM_CLASSES), jnp.float32, -bound2, bound2)
    return w1, b1, w2, b2


if __name__ == "__main__":
    key = jax.random.PRNGKey(0)
    kx, kp = jax.random.split(key)

    batch = 64
    x = jax.random.normal(kx, (batch, INPUT_SIZE), jnp.float32)
    w1, b1, w2, b2 = init_params(kp)

    # One-time parameter prep (hoisted out of the forward path).
    params = prepare_params(w1, b1, w2, b2)

    out = nn_forward(x, *params)
    out = jax.block_until_ready(out)
    assert out.shape == (batch, NUM_CLASSES)

    # Reference 1: identical bf16-operand / f32-accumulate math in plain JAX.
    h_ref = jnp.maximum(
        jnp.dot(x.astype(jnp.bfloat16), w1.astype(jnp.bfloat16),
                preferred_element_type=jnp.float32) + b1, 0.0)
    ref_bf16 = jnp.dot(h_ref.astype(jnp.bfloat16), w2.astype(jnp.bfloat16),
                       preferred_element_type=jnp.float32) + b2
    assert jnp.allclose(out, ref_bf16, atol=2e-3, rtol=2e-3)

    # Reference 2: full f32 forward — semantics preserved within bf16 error.
    ref_f32 = jnp.maximum(x @ w1 + b1, 0.0) @ w2 + b2
    assert jnp.allclose(out, ref_f32, atol=5e-2, rtol=5e-2)

    print("KERNEL_OK")
</pallas_src>

<mosaic_0001>
module attributes {stable_mosaic.version = 11 : i64} {
  func.func @mlp_kernel(%arg0: i32, %arg1: memref<64x784xf32, #tpu.memory_space<vmem>>, %arg2: memref<784x128xbf16, #tpu.memory_space<vmem>>, %arg3: memref<1x128xf32, #tpu.memory_space<vmem>>, %arg4: memref<128x10xbf16, #tpu.memory_space<vmem>>, %arg5: memref<1x10xf32, #tpu.memory_space<vmem>>, %arg6: memref<64x10xf32, #tpu.memory_space<vmem>>) attributes {dimension_semantics = [#tpu.dimension_semantics<parallel>], iteration_bounds = array<i64: 1>, scalar_prefetch = 0 : i64, scratch_operands = 0 : i64, tpu.core_type = #tpu.core_type<tc>, window_params = [{transform_indices = @transform_0, window_bounds = array<i64: 64, 784>}, {pipeline_mode = #tpu.pipeline_mode<synchronous>, transform_indices = @transform_1, window_bounds = array<i64: 784, 128>}, {pipeline_mode = #tpu.pipeline_mode<synchronous>, transform_indices = @transform_2, window_bounds = array<i64: 1, 128>}, {pipeline_mode = #tpu.pipeline_mode<synchronous>, transform_indices = @transform_3, window_bounds = array<i64: 128, 10>}, {pipeline_mode = #tpu.pipeline_mode<synchronous>, transform_indices = @transform_4, window_bounds = array<i64: 1, 10>}, {transform_indices = @transform_5, window_bounds = array<i64: 64, 10>}]} {
    %c0 = arith.constant 0 : index
    %c0_0 = arith.constant 0 : index
    %0 = vector.load %arg1[%c0, %c0_0] : memref<64x784xf32, #tpu.memory_space<vmem>>, vector<64x784xf32>
    %1 = arith.truncf %0 : vector<64x784xf32> to vector<64x784xbf16>
    %c0_1 = arith.constant 0 : index
    %c0_2 = arith.constant 0 : index
    %2 = vector.load %arg2[%c0_1, %c0_2] : memref<784x128xbf16, #tpu.memory_space<vmem>>, vector<784x128xbf16>
    %cst = arith.constant dense<0.000000e+00> : vector<64x128xf32>
    %3 = tpu.matmul %1, %2, %cst {dimension_numbers = #tpu.dot_dimension_numbers<[1], [0], [0], [1], [0, 0, 1, 1], [], []>} : vector<64x784xbf16>, vector<784x128xbf16>, vector<64x128xf32> -> vector<64x128xf32>
    %c0_3 = arith.constant 0 : index
    %c0_4 = arith.constant 0 : index
    %4 = vector.load %arg3[%c0_3, %c0_4] : memref<1x128xf32, #tpu.memory_space<vmem>>, vector<1x128xf32>
    %5 = vector.broadcast %4 : vector<1x128xf32> to vector<64x128xf32>
    %6 = arith.addf %3, %5 : vector<64x128xf32>
    %cst_5 = arith.constant 0.000000e+00 : f32
    %7 = vector.broadcast %cst_5 : f32 to vector<64x128xf32>
    %8 = arith.maximumf %6, %7 : vector<64x128xf32>
    %9 = arith.truncf %8 : vector<64x128xf32> to vector<64x128xbf16>
    %c0_6 = arith.constant 0 : index
    %c0_7 = arith.constant 0 : index
    %10 = vector.load %arg4[%c0_6, %c0_7] : memref<128x10xbf16, #tpu.memory_space<vmem>>, vector<128x10xbf16>
    %cst_8 = arith.constant dense<0.000000e+00> : vector<64x10xf32>
    %11 = tpu.matmul %9, %10, %cst_8 {dimension_numbers = #tpu.dot_dimension_numbers<[1], [0], [0], [1], [0, 0, 1, 1], [], []>} : vector<64x128xbf16>, vector<128x10xbf16>, vector<64x10xf32> -> vector<64x10xf32>
    %c0_9 = arith.constant 0 : index
    %c0_10 = arith.constant 0 : index
    %12 = vector.load %arg5[%c0_9, %c0_10] : memref<1x10xf32, #tpu.memory_space<vmem>>, vector<1x10xf32>
    %13 = vector.broadcast %12 : vector<1x10xf32> to vector<64x10xf32>
    %14 = arith.addf %11, %13 : vector<64x10xf32>
    %c0_11 = arith.constant 0 : index
    %c0_12 = arith.constant 0 : index
    %15 = vector.load %arg6[%c0_11, %c0_12] : memref<64x10xf32, #tpu.memory_space<vmem>>, vector<64x10xf32>
    tpu.vector_store %arg6[%c0_11, %c0_12], %14 {strides = array<i32>} : memref<64x10xf32, #tpu.memory_space<vmem>>, vector<64x10xf32>,
    return
  }
  func.func @transform_0(%arg0: i32) -> (i32, i32) {
    %c0_i32 = arith.constant 0 : i32
    %c0_i32_0 = arith.constant 0 : i32
    return %arg0, %c0_i32 : i32, i32
  }
  func.func @transform_1(%arg0: i32) -> (i32, i32) {
    %c0_i32 = arith.constant 0 : i32
    %c0_i32_0 = arith.constant 0 : i32
    %c0_i32_1 = arith.constant 0 : i32
    return %c0_i32, %c0_i32_0 : i32, i32
  }
  func.func @transform_2(%arg0: i32) -> (i32, i32) {
    %c0_i32 = arith.constant 0 : i32
    %c0_i32_0 = arith.constant 0 : i32
    %c0_i32_1 = arith.constant 0 : i32
    return %c0_i32, %c0_i32_0 : i32, i32
  }
  func.func @transform_3(%arg0: i32) -> (i32, i32) {
    %c0_i32 = arith.constant 0 : i32
    %c0_i32_0 = arith.constant 0 : i32
    %c0_i32_1 = arith.constant 0 : i32
    return %c0_i32, %c0_i32_0 : i32, i32
  }
  func.func @transform_4(%arg0: i32) -> (i32, i32) {
    %c0_i32 = arith.constant 0 : i32
    %c0_i32_0 = arith.constant 0 : i32
    %c0_i32_1 = arith.constant 0 : i32
    return %c0_i32, %c0_i32_0 : i32, i32
  }
  func.func @transform_5(%arg0: i32) -> (i32, i32) {
    %c0_i32 = arith.constant 0 : i32
    %c0_i32_0 = arith.constant 0 : i32
    return %arg0, %c0_i32 : i32, i32
  }
}

</mosaic_0001>

<bundles_post_ra>
// kernel: tpu_custom_call.1
= control target key start
LH: loop header
LB: loop body
LE: loop exit
PB: predicated region body
PF: predicated region fallthrough
CT: control target
= control target key end

     0   :  { %10 = vsyncpa [#allocation3], 0  ;;  %s1455_s0 = inlined_call_operand.hbm [shape: f32[64,784], index: 0, kind: input, shape index: {}]   ;;  %s1456_s1 = inlined_call_operand.hbm [shape: bf16[784,128], index: 1, kind: input, shape index: {}]   ;;  %s1457_s2 = inlined_call_operand.vmem [shape: f32[1,128], index: 2, kind: input, shape index: {}]   ;;  %s1458_s3 = inlined_call_operand.vmem [shape: bf16[128,10], index: 3, kind: input, shape index: {}]   ;;  %s1459_s4 = inlined_call_operand.vmem [shape: f32[1,10], index: 4, kind: input, shape index: {}]   ;;  %s1460_s5 = inlined_call_operand.vmem [shape: f32[64,10], index: 5, kind: output, shape index: {}]  }
   0x1   :  { %11 = vsyncpa [#allocation5], 0  ;;  %s1329_s18 = smov [#allocation2]   ;;  %s1281_s22 = scalar_lea.hbm %s1455_s0, 7168 }
   0x2   :  { %s17_s19 = sshll.u32 %s1329_s18, 4  ;;  %p1282_p0 = scmp.ne.s32.totalorder %s1455_s0, %s1281_s22  ;;  %s18_s19 = int_to_ptr.vmem [resolvable:$true] %s17_s19 }
   0x3   :  { %p1285_p1 = scmp.lt.u32.totalorder %s1281_s22, %s1455_s0 }
   0x5   :  { %p1287_p2 = pnand %p1285_p1, %p1282_p0 }
   0x7   :  { %1290 = shalt.err (!%p1287_p2)
}
   0x8   :  { %s1291_s27 = scalar_lea.vmem %s18_s19, 7168  ;;  %p1296_p4 = scmp.lt.s32.totalorder %s18_s19, %s18_s19 }
   0x9   :  { %p1292_p3 = scmp.ne.s32.totalorder %s18_s19, %s1291_s27  ;;  %p1297_p5 = scmp.lt.s32.totalorder %s1291_s27, %s1291_s27 }
   0xb   :  { %p1298_p6 = por %p1297_p5, %p1296_p4 }
   0xd   :  { %p1299_p7 = pnand %p1298_p6, %p1292_p3 }
   0xf   :  { %1302 = shalt.err (!%p1299_p7)
}
  0x10   :  { %s1330_s28 = smov 896   ;;  %s1331_s29 = smov 56  }
  0x11   :  { %23 = dma.hbm_to_vmem [thread:$0]  %s1455_s0, 7168, %s18_s19, [#allocation3], %s1330_s28, %s1330_s28, %s1331_s29  }
  0x12   :  { %s1332_s7 = smov [#allocation4]   ;;  %s1303_s11 = scalar_lea.hbm %s1456_s1, 6272 }
  0x13   :  { %s29_s8 = sshll.u32 %s1332_s7, 4  ;;  %p1304_p8 = scmp.ne.s32.totalorder %s1456_s1, %s1303_s11  ;;  %s30_s8 = int_to_ptr.vmem [resolvable:$true] %s29_s8 }
  0x14   :  { %p1307_p9 = scmp.lt.u32.totalorder %s1303_s11, %s1456_s1 }
  0x16   :  { %p1309_p10 = pnand %p1307_p9, %p1304_p8 }
  0x18   :  { %1312 = shalt.err (!%p1309_p10)
}
  0x19   :  { %s1313_s16 = scalar_lea.vmem %s30_s8, 6272  ;;  %p1318_p12 = scmp.lt.s32.totalorder %s30_s8, %s30_s8 }
  0x1a   :  { %p1314_p11 = scmp.ne.s32.totalorder %s30_s8, %s1313_s16  ;;  %p1319_p13 = scmp.lt.s32.totalorder %s1313_s16, %s1313_s16 }
  0x1c   :  { %p1320_p0 = por %p1319_p13, %p1318_p12 }
  0x1e   :  { %p1321_p1 = pnand %p1320_p0, %p1314_p11 }
  0x20   :  { %1324 = shalt.err (!%p1321_p1)
}
  0x21   :  { %s1333_s0 = smov 64   ;;  %s1334_s17 = smov 4  }
  0x22   :  { %35 = dma.hbm_to_vmem [thread:$0]  %s1456_s1, 6272, %s30_s8, [#allocation5], %s1333_s0, %s1333_s0, %s1334_s17  }
  0x23   :  { %1325 = dma.done.wait [#allocation3], 7168  }
  0x24   :  { %1326 = vsyncadd [#allocation3], 4294960128 }
  0x25   :  { %1327 = dma.done.wait [#allocation5], 6272  }
  0x26   :  { %1328 = vsyncadd [#allocation5], 4294961024  ;;  %v1224_v0 = vld [vmem:[#allocation4 + $0x40] sm:$0xff]   ;;  %v1228_v4 = vld [vmem:[#allocation4 + $0x48] sm:$0xff]   ;;  %vm532_vm0 = vcmask 130048   ;;  %vm953_vm1 = vcmask 80896  }
  0x27   :  { %v1225_v1 = vld [vmem:[#allocation4] sm:$0xff]   ;;  %1031 = vmatprep.subr.bf16.mxu0 %v1224_v0  ;;  %v1229_v5 = vld [vmem:[#allocation4 + $0x8] sm:$0xff]   ;;  %v1232_v8 = vld [vmem:[#allocation4 + $0x50] sm:$0xff]  }
  0x28   :  { %v1226_v2 = vld [vmem:[#allocation4 + $0xc0] sm:$0xff]   ;;  %1032 = vmatpush3.bf16.msra.mxu0 %v1225_v1  ;;  %v1230_v6 = vld [vmem:[#allocation4 + $0xc8] sm:$0xff]   ;;  %v1233_v9 = vld [vmem:[#allocation4 + $0x10] sm:$0xff]  }
  0x29   :  { %v1227_v3 = vld [vmem:[#allocation4 + $0x80] sm:$0xff]   ;;  %1071 = vmatprep.subr.bf16.mxu1 %v1226_v2  ;;  %1033 = vmatprep.subr.bf16.mxu0 %v1228_v4  ;;  %v1231_v7 = vld [vmem:[#allocation4 + $0x88] sm:$0xff]   ;;  %v1234_v10 = vld [vmem:[#allocation4 + $0xd0] sm:$0xff]  }
  0x2a   :  { %1072 = vmatpush3.bf16.msra.mxu1 %v1227_v3  ;;  %v1235_v11 = vld [vmem:[#allocation4 + $0x90] sm:$0xff]   ;;  %v1236_v12 = vld [vmem:[#allocation4 + $0x58] sm:$0xff]   ;;  %v1240_v16 = vld [vmem:[#allocation4 + $0x60] sm:$0xff]  }
  0x2b   :  { %1073 = vmatprep.subr.bf16.mxu1 %v1230_v6  ;;  %v1237_v13 = vld [vmem:[#allocation4 + $0x18] sm:$0xff]   ;;  %v1241_v17 = vld [vmem:[#allocation4 + $0x20] sm:$0xff]   ;;  %v1244_v20 = vld [vmem:[#allocation4 + $0x68] sm:$0xff]  }
  0x2c   :  { %1034 = vmatpush3.bf16.msra.mxu0 %v1229_v5  ;;  %v1238_v14 = vld [vmem:[#allocation4 + $0xd8] sm:$0xff]   ;;  %v1242_v18 = vld [vmem:[#allocation4 + $0xe0] sm:$0xff]   ;;  %v1245_v21 = vld [vmem:[#allocation4 + $0x28] sm:$0xff]  }
  0x2d   :  { %1035 = vmatprep.subr.bf16.mxu0 %v1232_v8  ;;  %v1239_v15 = vld [vmem:[#allocation4 + $0x98] sm:$0xff]   ;;  %v1243_v19 = vld [vmem:[#allocation4 + $0xa0] sm:$0xff]   ;;  %v1246_v22 = vld [vmem:[#allocation4 + $0xe8] sm:$0xff]  }
  0x2e   :  { %1074 = vmatpush3.bf16.msra.mxu1 %v1231_v7  ;;  %v1247_v23 = vld [vmem:[#allocation4 + $0xa8] sm:$0xff]   ;;  %v1248_v24 = vld [vmem:[#allocation4 + $0x70] sm:$0xff]   ;;  %v1252_v28 = vld [vmem:[#allocation4 + $0x78] sm:$0xff]  }
  0x2f   :  { %1075 = vmatprep.subr.bf16.mxu1 %v1234_v10  ;;  %v1249_v25 = vld [vmem:[#allocation4 + $0x30] sm:$0xff]   ;;  %v1253_v29 = vld [vmem:[#allocation4 + $0x38] sm:$0xff]   ;;  %v50_v31 = vld [vmem:[#allocation2 + $0x8] sm:$0xff] }
  0x30   :  { %1036 = vmatpush3.bf16.msra.mxu0 %v1233_v9  ;;  %v1250_v26 = vld [vmem:[#allocation4 + $0xf0] sm:$0xff]   ;;  %v1254_v30 = vld [vmem:[#allocation4 + $0xf8] sm:$0xff]   ;;  %v57_v32 = vld [vmem:[#allocation2 + $0x40] sm:$0xff] }
  0x31   :  { %1037 = vmatprep.subr.bf16.mxu0 %v1236_v12  ;;  %v1251_v27 = vld [vmem:[#allocation4 + $0xb0] sm:$0xff]   ;;  %v106_v33 = vpack.c.bf16 %v57_v32, %v50_v31  ;;  %v1255_v34 = vld [vmem:[#allocation4 + $0xb8] sm:$0xff]   ;;  %v49_v35 = vld [vmem:[#allocation2] sm:$0xff] }
  0x32   :  { %1076 = vmatpush3.bf16.msra.mxu1 %v1235_v11  ;;  %v56_v36 = vld [vmem:[#allocation2 + $0x38] sm:$0xff]  ;;  %v1256_v38 = vld [vmem:[#allocation4 + $0x140] sm:$0xff]   ;;  %v59_v40 = vld [vmem:[#allocation2 + $0x50] sm:$0xff] }
  0x33   :  { %1077 = vmatprep.subr.bf16.mxu1 %v1238_v14  ;;  %577 = vmatprep.mubr.bf16.mxu0 %v106_v33  ;;  %v105_v37 = vpack.c.bf16 %v56_v36, %v49_v35  ;;  %v52_v39 = vld [vmem:[#allocation2 + $0x18] sm:$0xff]  ;;  %v1257_v42 = vld [vmem:[#allocation4 + $0x100] sm:$0xff]   ;;  %v51_v43 = vld [vmem:[#allocation2 + $0x10] sm:$0xff] }
  0x34   :  { %1038 = vmatpush3.bf16.msra.mxu0 %v1237_v13  ;;  %v108_v41 = vpack.c.bf16 %v59_v40, %v52_v39  ;;  %v58_v44 = vld [vmem:[#allocation2 + $0x48] sm:$0xff]  ;;  %v64_v48 = vld [vmem:[#allocation2 + $0x78] sm:$0xff]  ;;  %v71_v49 = vld [vmem:[#allocation2 + $0xb0] sm:$0xff] }
  0x35   :  { %1039 = vmatprep.subr.bf16.mxu0 %v1240_v16  ;;  %v107_v45 = vpack.c.bf16 %v58_v44, %v51_v43  ;;  %v1258_v46 = vld [vmem:[#allocation4 + $0x148] sm:$0xff]   ;;  %v63_v50 = vld [vmem:[#allocation2 + $0x70] sm:$0xff]  ;;  %v113_v52 = vpack.c.bf16 %v71_v49, %v64_v48  ;;  %v73_v56 = vld [vmem:[#allocation2 + $0xc0] sm:$0xff] }
  0x36   :  { %1078 = vmatpush3.bf16.msra.mxu1 %v1239_v15  ;;  %642 = vmatprep.mubr.bf16.mxu1 %v108_v41  ;;  %v1259_v47 = vld [vmem:[#allocation4 + $0x108] sm:$0xff]   ;;  %v1260_v54 = vld [vmem:[#allocation4 + $0x150] sm:$0xff]   ;;  %v65_v59 = vld [vmem:[#allocation2 + $0x80] sm:$0xff] }
  0x37   :  { %1079 = vmatprep.subr.bf16.mxu1 %v1242_v18  ;;  %v70_v51 = vld [vmem:[#allocation2 + $0xa8] sm:$0xff]  ;;  %v1261_v58 = vld [vmem:[#allocation4 + $0x110] sm:$0xff]   ;;  %v72_v60 = vld [vmem:[#allocation2 + $0xb8] sm:$0xff] }
  0x38   :  { %1040 = vmatpush3.bf16.msra.mxu0 %v1241_v17  ;;  %v112_v53 = vpack.c.bf16 %v70_v51, %v63_v50  ;;  %v66_v55 = vld [vmem:[#allocation2 + $0x88] sm:$0xff]  ;;  %v114_v61 = vpack.c.bf16 %v72_v60, %v65_v59  ;;  %v1262_v62 = vld [vmem:[#allocation4 + $0x158] sm:$0xff]   ;;  %v85_v1 = vld [vmem:[#allocation2 + $0x120] sm:$0xff] }
  0x39   :  { %1041 = vmatprep.subr.bf16.mxu0 %v1244_v20  ;;  %v115_v57 = vpack.c.bf16 %v73_v56, %v66_v55  ;;  %v1263_v63 = vld [vmem:[#allocation4 + $0x118] sm:$0xff]   ;;  %v78_v0 = vld [vmem:[#allocation2 + $0xe8] sm:$0xff]  ;;  %v77_v3 = vld [vmem:[#allocation2 + $0xe0] sm:$0xff] }
  0x3a   :  { %1080 = vmatpush3.bf16.msra.mxu1 %v1243_v19  ;;  %v120_v2 = vpack.c.bf16 %v85_v1, %v78_v0  ;;  %v84_v4 = vld [vmem:[#allocation2 + $0x118] sm:$0xff]  ;;  %v1264_v5 = vld [vmem:[#allocation4 + $0x160] sm:$0xff]   ;;  %v87_v8 = vld [vmem:[#allocation2 + $0x130] sm:$0xff] }
  0x3b   :  { %1081 = vmatprep.subr.bf16.mxu1 %v1246_v22  ;;  %v80_v6 = vld [vmem:[#allocation2 + $0xf8] sm:$0xff]  ;;  %v119_v7 = vpack.c.bf16 %v84_v4, %v77_v3  ;;  %v1265_v10 = vld [vmem:[#allocation4 + $0x120] sm:$0xff]   ;;  %v79_v11 = vld [vmem:[#allocation2 + $0xf0] sm:$0xff] }
  0x3c   :  { %1042 = vmatpush3.bf16.msra.mxu0 %v1245_v21  ;;  %v122_v9 = vpack.c.bf16 %v87_v8, %v80_v6  ;;  %v86_v12 = vld [vmem:[#allocation2 + $0x128] sm:$0xff]  ;;  %v1266_v13 = vld [vmem:[#allocation4 + $0x180] sm:$0xff]   ;;  %v92_v17 = vld [vmem:[#allocation2 + $0x158] sm:$0xff] }
  0x3d   :  { %1043 = vmatprep.subr.bf16.mxu0 %v1248_v24  ;;  %v121_v14 = vpack.c.bf16 %v86_v12, %v79_v11  ;;  %v1267_v15 = vld [vmem:[#allocation4 + $0x168] sm:$0xff]   ;;  %v99_v18 = vld [vmem:[#allocation2 + $0x190] sm:$0xff]  ;;  %v101_v24 = vld [vmem:[#allocation2 + $0x1a0] sm:$0xff] }
  0x3e   :  { %1082 = vmatpush3.bf16.msra.mxu1 %v1247_v23  ;;  %v1268_v16 = vld [vmem:[#allocation4 + $0x128] sm:$0xff]   ;;  %v91_v19 = vld [vmem:[#allocation2 + $0x150] sm:$0xff]  ;;  %v127_v20 = vpack.c.bf16 %v99_v18, %v92_v17  ;;  %v1272_v33 = vld [vmem:[#allocation4 + $0x138] sm:$0xff]  }
  0x3f   :  { %1083 = vmatprep.subr.bf16.mxu1 %v1250_v26  ;;  %v98_v21 = vld [vmem:[#allocation2 + $0x188] sm:$0xff]  ;;  %v1269_v22 = vld [vmem:[#allocation4 + $0x170] sm:$0xff]   ;;  %v53_v35 = vld [vmem:[#allocation2 + $0x20] sm:$0xff] }
  0x40   :  { %1044 = vmatpush3.bf16.msra.mxu0 %v1249_v25  ;;  %v94_v23 = vld [vmem:[#allocation2 + $0x168] sm:$0xff]  ;;  %v126_v25 = vpack.c.bf16 %v98_v21, %v91_v19  ;;  %v68_v41 = vld [vmem:[#allocation2 + $0x98] sm:$0xff]  ;;  %v69_v44 = vld [vmem:[#allocation2 + $0xa0] sm:$0xff] }
  0x41   :  { %1045 = vmatprep.subr.bf16.mxu0 %v1252_v28  ;;  %v129_v26 = vpack.c.bf16 %v101_v24, %v94_v23  ;;  %v93_v28 = vld [vmem:[#allocation2 + $0x160] sm:$0xff]  ;;  %v54_v32 = vld [vmem:[#allocation2 + $0x28] sm:$0xff]  ;;  %v67_v50 = vld [vmem:[#allocation2 + $0x90] sm:$0xff] }
  0x42   :  { %1084 = vmatpush3.bf16.msra.mxu1 %v1251_v27  ;;  %v1270_v27 = vld [vmem:[#allocation4 + $0x130] sm:$0xff]   ;;  %v62_v39 = vld [vmem:[#allocation2 + $0x68] sm:$0xff]  ;;  %v97_v55 = vld [vmem:[#allocation2 + $0x180] sm:$0xff] }
  0x43   :  { %1085 = vmatprep.subr.bf16.mxu1 %v1254_v30  ;;  %v1271_v30 = vld [vmem:[#allocation4 + $0x178] sm:$0xff]   ;;  %v90_v48 = vld [vmem:[#allocation2 + $0x148] sm:$0xff]  ;;  %v81_v60 = vld [vmem:[#allocation2 + $0x100] sm:$0xff] }
  0x44   :  { %1046 = vmatpush3.bf16.msra.mxu0 %v1253_v29  ;;  %v100_v29 = vld [vmem:[#allocation2 + $0x198] sm:$0xff]  ;;  %v74_v51 = vld [vmem:[#allocation2 + $0xc8] sm:$0xff]  ;;  %v1279_v11 = vld [vmem:[%s1458_s3 + $0x30] sm:$0xff]  }
  0x45   :  { %1111 = vmatprep.subr.bf16.mxu0 %v1256_v38  ;;  %v128_v31 = vpack.c.bf16 %v100_v29, %v93_v28  ;;  %v55_v38 = vld [vmem:[#allocation2 + $0x30] sm:$0xff]  ;;  %v104_v56 = vld [vmem:[#allocation2 + $0x1b8] sm:$0xff]  ;;  %v102_v3 = vld [vmem:[#allocation2 + $0x1a8] sm:$0xff] }
  0x46   :  { %1086 = vmatpush3.bf16.msra.mxu1 %v1255_v34  ;;  %v61_v34 = vld [vmem:[#allocation2 + $0x60] sm:$0xff]  ;;  %v111_v40 = vpack.c.bf16 %v62_v39, %v55_v38  ;;  %v132_v59 = vpack.c.bf16 %v104_v56, %v97_v55  ;;  %v1274_v6 = vld [vmem:[%s1458_s3 + $0x8] sm:$0xff]   ;;  %v1276_v8 = vld [vmem:[%s1458_s3 + $0x18] sm:$0xff]  }
  0x47   :  { %578 = vmatmul.mubr.bf16.vlgmr.msra.gmra.mrb[0].mxu0 %v105_v37  ;;  %1168 = vmatprep.subr.bf16.mxu1 %v1266_v13  ;;  %v110_v36 = vpack.c.bf16 %v61_v34, %v54_v32  ;;  %v60_v37 = vld [vmem:[#allocation2 + $0x58] sm:$0xff] }
  0x48   :  { %1112 = vmatpush3.bf16.msra.mxu0 %v1257_v42  ;;  %585 = vmatprep.mubr.bf16.mxu0 %v113_v52  ;;  %v75_v42 = vld [vmem:[#allocation2 + $0xd0] sm:$0xff]  ;;  %v109_v43 = vpack.c.bf16 %v60_v37, %v53_v35  ;;  %v82_v52 = vld [vmem:[#allocation2 + $0x108] sm:$0xff]  ;;  %v1280_v12 = vld [vmem:[%s1458_s3 + $0x38] sm:$0xff]  }
  0x49   :  { %643 = vmatmul.mubr.bf16.vlgmr.msra.gmra.mrb[0].mxu1 %v107_v45  ;;  %1113 = vmatprep.subr.bf16.mxu0 %v1258_v46  ;;  %v76_v45 = vld [vmem:[#allocation2 + $0xd8] sm:$0xff]  ;;  %v117_v46 = vpack.c.bf16 %v75_v42, %v68_v41 }
  0x4a   :  { %650 = vmatprep.mubr.bf16.mxu1 %v115_v57  ;;  %1169 = vmatpush3.bf16.msra.mxu1 %v1266_v13  ;;  %v118_v49 = vpack.c.bf16 %v76_v45, %v69_v44  ;;  %v116_v57 = vpack.c.bf16 %v74_v51, %v67_v50 }
  0x4c   :  { %1114 = vmatpush3.bf16.msra.mxu0 %v1259_v47  ;;  %v83_v47 = vld [vmem:[#allocation2 + $0x110] sm:$0xff] }
  0x4d   :  { %1115 = vmatprep.subr.bf16.mxu0 %v1260_v54  ;;  %v125_v54 = vpack.c.bf16 %v90_v48, %v83_v47 }
  0x4f   :  { %586 = vmatmul.mubr.bf16.gmra.mrb[4].mxu0 %v112_v53  ;;  %v89_v53 = vld [vmem:[#allocation2 + $0x140] sm:$0xff] }
  0x50   :  { %1116 = vmatpush3.bf16.msra.mxu0 %v1261_v58  ;;  %593 = vmatprep.mubr.bf16.mxu0 %v120_v2  ;;  %v124_v58 = vpack.c.bf16 %v89_v53, %v82_v52  ;;  %v95_v2 = vld [vmem:[#allocation2 + $0x170] sm:$0xff] }
  0x51   :  { %1117 = vmatprep.subr.bf16.mxu0 %v1262_v62  ;;  %651 = vmatmul.mubr.bf16.gmra.mrb[4].mxu1 %v114_v61  ;;  %v88_v61 = vld [vmem:[#allocation2 + $0x138] sm:$0xff]  ;;  %v130_v4 = vpack.c.bf16 %v102_v3, %v95_v2 }
  0x52   :  { %658 = vmatprep.mubr.bf16.mxu1 %v122_v9  ;;  %v96_v62 = vld [vmem:[#allocation2 + $0x178] sm:$0xff]  ;;  %v123_v0 = vpack.c.bf16 %v88_v61, %v81_v60  ;;  %v1277_v9 = vld [vmem:[%s1458_s3 + $0x20] sm:$0xff]  }
  0x54   :  { %1118 = vmatpush3.bf16.msra.mxu0 %v1263_v63  ;;  %v103_v63 = vld [vmem:[#allocation2 + $0x1b0] sm:$0xff] }
  0x55   :  { %1119 = vmatprep.subr.bf16.mxu0 %v1264_v5  ;;  %v131_v1 = vpack.c.bf16 %v103_v63, %v96_v62  ;;  %v1273_v5 = vld [vmem:[%s1458_s3] sm:$0xff]  }
  0x56   :  { %1202 = vmatprep.subr.bf16.mxu1 %v1273_v5 }
  0x57   :  { %594 = vmatmul.mubr.bf16.gmra.mrb[8].mxu0 %v119_v7  ;;  %v1275_v7 = vld [vmem:[%s1458_s3 + $0x10] sm:$0xff]  }
  0x58   :  { %1120 = vmatpush3.bf16.msra.mxu0 %v1265_v10  ;;  %601 = vmatprep.mubr.bf16.mxu0 %v127_v20  ;;  %v1278_v10 = vld [vmem:[%s1458_s3 + $0x28] sm:$0xff]  }
  0x59   :  { %1121 = vmatprep.subr.bf16.mxu0 %v1267_v15  ;;  %659 = vmatmul.mubr.bf16.gmra.mrb[8].mxu1 %v121_v14  ;;  %v968_v14 = vld [vmem:[%s1457_s2] ss:$0 sm:$0xff] }
  0x5a   :  { %666 = vmatprep.mubr.bf16.mxu1 %v129_v26 }
  0x5c   :  { %1122 = vmatpush3.bf16.msra.mxu0 %v1268_v16 }
  0x5d   :  { %1123 = vmatprep.subr.bf16.mxu0 %v1269_v22 }
  0x5f   :  { %602 = vmatmul.mubr.bf16.gmra.mrb[12].mxu0 %v126_v25 }
  0x60   :  { %1124 = vmatpush3.bf16.msra.mxu0 %v1270_v27  ;;  %707 = vmatprep.mubr.bf16.mxu0 %v110_v36 }
  0x61   :  { %1125 = vmatprep.subr.bf16.mxu0 %v1271_v30  ;;  %667 = vmatmul.mubr.bf16.gmra.mrb[12].mxu1 %v128_v31 }
  0x62   :  { %1170 = vmatprep.mubr.msk.bf16.mxu1 %vm532_vm0, %v111_v40 }
  0x64   :  { %1126 = vmatpush3.bf16.msra.mxu0 %v1272_v33 }
  0x65   :  { %1178 = vmatprep.subr.bf16.mxu0 %v1273_v5 }
  0x67   :  { %708 = vmatmul.mubr.bf16.vlgmr.msra.gmra.mrb[16].mxu0 %v109_v43 }
  0x68   :  { %715 = vmatprep.mubr.bf16.mxu0 %v117_v46  ;;  %1179 = vmatpush3.bf16.msra.mxu0 %v1273_v5 }
  0x69   :  { %1171 = vmatmul.mubr.msk.bf16.vlgmr.msra.gmra.mrb[16].mxu1 %vm532_vm0, %v118_v49  ;;  %1180 = vmatprep.subr.bf16.mxu0 %v1274_v6 }
  0x6a   :  { %1174 = vmatprep.mubr.msk.bf16.mxu1 %vm532_vm0, %v125_v54  ;;  %1210 = vmatpush3.bf16.msra.mxu1 %v1273_v5 }
  0x6b   :  { %1203 = vmatprep.subr.bf16.mxu1 %v1274_v6 }
  0x6c   :  { %1181 = vmatpush3.bf16.msra.mxu0 %v1274_v6 }
  0x6d   :  { %1182 = vmatprep.subr.bf16.mxu0 %v1275_v7 }
  0x6e   :  { %1211 = vmatpush3.bf16.msra.mxu1 %v1274_v6 }
  0x6f   :  { %716 = vmatmul.mubr.bf16.gmra.mrb[20].mxu0 %v116_v57  ;;  %1204 = vmatprep.subr.bf16.mxu1 %v1275_v7 }
  0x70   :  { %723 = vmatprep.mubr.bf16.mxu0 %v124_v58  ;;  %1183 = vmatpush3.bf16.msra.mxu0 %v1275_v7 }
  0x71   :  { %1175 = vmatmul.mubr.msk.bf16.gmra.mrb[20].mxu1 %vm532_vm0, %v132_v59  ;;  %1184 = vmatprep.subr.bf16.mxu0 %v1276_v8 }
  0x72   :  { %1212 = vmatpush3.bf16.msra.mxu1 %v1275_v7 }
  0x73   :  { %1205 = vmatprep.subr.bf16.mxu1 %v1276_v8 }
  0x74   :  { %1185 = vmatpush3.bf16.msra.mxu0 %v1276_v8 }
  0x75   :  { %1186 = vmatprep.subr.bf16.mxu0 %v1277_v9 }
  0x76   :  { %1213 = vmatpush3.bf16.msra.mxu1 %v1276_v8 }
  0x77   :  { %724 = vmatmul.mubr.bf16.gmra.mrb[24].mxu0 %v123_v0  ;;  %1206 = vmatprep.subr.bf16.mxu1 %v1277_v9 }
  0x78   :  { %731 = vmatprep.mubr.bf16.mxu0 %v131_v1  ;;  %1187 = vmatpush3.bf16.msra.mxu0 %v1277_v9 }
  0x79   :  { %1188 = vmatprep.subr.bf16.mxu0 %v1278_v10 }
  0x7a   :  { %1214 = vmatpush3.bf16.msra.mxu1 %v1277_v9 }
  0x7b   :  { %1207 = vmatprep.subr.bf16.mxu1 %v1278_v10 }
  0x7c   :  { %1189 = vmatpush3.bf16.msra.mxu0 %v1278_v10 }
  0x7d   :  { %1190 = vmatprep.subr.bf16.mxu0 %v1279_v11 }
  0x7e   :  { %1215 = vmatpush3.bf16.msra.mxu1 %v1278_v10 }
  0x7f   :  { %732 = vmatmul.mubr.bf16.gmra.mrb[28].mxu0 %v130_v4  ;;  %1208 = vmatprep.subr.bf16.mxu1 %v1279_v11 }
  0x80   :  { %1191 = vmatpush3.bf16.msra.mxu0 %v1279_v11 }
  0x81   :  { %1192 = vmatprep.subr.bf16.mxu0 %v1280_v12 }
  0x82   :  { %1216 = vmatpush3.bf16.msra.mxu1 %v1279_v11 }
  0x83   :  { %1209 = vmatprep.subr.bf16.mxu1 %v1280_v12 }
  0x84   :  { %1193 = vmatpush3.bf16.msra.mxu0 %v1280_v12 }
  0x86   :  { %1217 = vmatpush3.bf16.msra.mxu1 %v1280_v12 }
 0x11a   :  { %v1047_v13 = vpop.f32.mrb[0].mxu0 }
 0x11b   :  { %v1048_v15 = vpop.f32.mrb[1].mxu0 }
 0x11c   :  { %v1049_v16 = vadd.f32 %v1048_v15, %v1047_v13  ;;  %v1050_v17 = vpop.f32.mrb[2].mxu0  ;;  %v1087_v18 = vpop.f32.mrb[0].mxu1 }
 0x11d   :  { %v1051_v19 = vpop.f32.mrb[3].mxu0  ;;  %v1088_v22 = vpop.f32.mrb[1].mxu1 }
 0x11e   :  { %v580_v20 = vadd.f32 %v1049_v16, %v968_v14  ;;  %v1052_v21 = vadd.f32 %v1051_v19, %v1050_v17  ;;  %v1089_v23 = vadd.f32 %v1088_v22, %v1087_v18  ;;  %v1090_v24 = vpop.f32.mrb[2].mxu1 }
 0x11f   :  { %v1091_v26 = vpop.f32.mrb[3].mxu1 }
 0x120   :  { %v583_v25 = vadd.f32 %v1052_v21, %v968_v14  ;;  %v645_v27 = vadd.f32 %v1089_v23, %v580_v20  ;;  %v1092_v28 = vadd.f32 %v1091_v26, %v1090_v24 }
 0x122   :  { %v1053_v29 = vpop.f32.mrb[4].mxu0  ;;  %v648_v30 = vadd.f32 %v1092_v28, %v583_v25 }
 0x123   :  { %v1054_v31 = vpop.f32.mrb[5].mxu0 }
 0x124   :  { %v1055_v32 = vadd.f32 %v1054_v31, %v1053_v29  ;;  %v1056_v33 = vpop.f32.mrb[6].mxu0  ;;  %v1093_v34 = vpop.f32.mrb[4].mxu1 }
 0x125   :  { %v1057_v35 = vpop.f32.mrb[7].mxu0  ;;  %v1094_v38 = vpop.f32.mrb[5].mxu1 }
 0x126   :  { %v588_v36 = vadd.f32 %v1055_v32, %v968_v14  ;;  %v1058_v37 = vadd.f32 %v1057_v35, %v1056_v33  ;;  %v1095_v39 = vadd.f32 %v1094_v38, %v1093_v34  ;;  %v1096_v40 = vpop.f32.mrb[6].mxu1 }
 0x127   :  { %v1097_v42 = vpop.f32.mrb[7].mxu1 }
 0x128   :  { %v591_v41 = vadd.f32 %v1058_v37, %v968_v14  ;;  %v653_v43 = vadd.f32 %v1095_v39, %v588_v36  ;;  %v1098_v44 = vadd.f32 %v1097_v42, %v1096_v40 }
 0x12a   :  { %v1059_v45 = vpop.f32.mrb[8].mxu0  ;;  %v656_v46 = vadd.f32 %v1098_v44, %v591_v41 }
 0x12b   :  { %v1060_v47 = vpop.f32.mrb[9].mxu0 }
 0x12c   :  { %v1061_v48 = vadd.f32 %v1060_v47, %v1059_v45  ;;  %v1062_v49 = vpop.f32.mrb[10].mxu0  ;;  %v1099_v50 = vpop.f32.mrb[8].mxu1 }
 0x12d   :  { %v1063_v51 = vpop.f32.mrb[11].mxu0  ;;  %v1100_v54 = vpop.f32.mrb[9].mxu1 }
 0x12e   :  { %v596_v52 = vadd.f32 %v1061_v48, %v968_v14  ;;  %v1064_v53 = vadd.f32 %v1063_v51, %v1062_v49  ;;  %v1101_v55 = vadd.f32 %v1100_v54, %v1099_v50  ;;  %v1102_v56 = vpop.f32.mrb[10].mxu1 }
 0x12f   :  { %v1103_v58 = vpop.f32.mrb[11].mxu1 }
 0x130   :  { %v599_v57 = vadd.f32 %v1064_v53, %v968_v14  ;;  %v661_v59 = vadd.f32 %v1101_v55, %v596_v52  ;;  %v1104_v60 = vadd.f32 %v1103_v58, %v1102_v56 }
 0x132   :  { %v1065_v61 = vpop.f32.mrb[12].mxu0  ;;  %v664_v62 = vadd.f32 %v1104_v60, %v599_v57 }
 0x133   :  { %v1066_v63 = vpop.f32.mrb[13].mxu0 }
 0x134   :  { %v1067_v0 = vadd.f32 %v1066_v63, %v1065_v61  ;;  %v1068_v1 = vpop.f32.mrb[14].mxu0  ;;  %v1105_v2 = vpop.f32.mrb[12].mxu1 }
 0x135   :  { %v1069_v3 = vpop.f32.mrb[15].mxu0  ;;  %v1106_v6 = vpop.f32.mrb[13].mxu1 }
 0x136   :  { %v604_v4 = vadd.f32 %v1067_v0, %v968_v14  ;;  %v1070_v5 = vadd.f32 %v1069_v3, %v1068_v1  ;;  %v1107_v7 = vadd.f32 %v1106_v6, %v1105_v2  ;;  %v1108_v8 = vpop.f32.mrb[14].mxu1 }
 0x137   :  { %v1109_v10 = vpop.f32.mrb[15].mxu1 }
 0x138   :  { %v607_v9 = vadd.f32 %v1070_v5, %v968_v14  ;;  %v669_v11 = vadd.f32 %v1107_v7, %v604_v4  ;;  %v1110_v12 = vadd.f32 %v1109_v10, %v1108_v8 }
 0x13a   :  { %v1127_v13 = vpop.f32.mrb[16].mxu0  ;;  %v672_v15 = vadd.f32 %v1110_v12, %v607_v9 }
 0x13b   :  { %v1128_v16 = vpop.f32.mrb[17].mxu0 }
 0x13c   :  { %v1129_v17 = vadd.f32 %v1128_v16, %v1127_v13  ;;  %v1130_v18 = vpop.f32.mrb[18].mxu0  ;;  %v1172_v20 = vpop.f32.mrb[16].mxu1 }
 0x13d   :  { %v1131_v19 = vpop.f32.mrb[19].mxu0  ;;  %v774_v23 = vpop.f32.mrb[17].mxu1 }
 0x13e   :  { %v1132_v21 = vadd.f32 %v1131_v19, %v1130_v18  ;;  %v710_v22 = vadd.f32 %v1129_v17, %v645_v27  ;;  %v1173_v24 = vpop.f32.mrb[18].mxu1 }
 0x13f   :  { %v777_v28 = vpop.f32.mrb[19].mxu1 }
 0x140   :  { %v775_v25 = vadd.f32 %v774_v23, %v710_v22  ;;  %v713_v26 = vadd.f32 %v1132_v21, %v648_v30 }
 0x142   :  { %v778_v29 = vadd.f32 %v777_v28, %v713_v26  ;;  %v1133_v31 = vpop.f32.mrb[20].mxu0  ;;  %v805_v32 = vmax.f32 %v775_v25, 0.0 }
 0x143   :  { %v1134_v14 = vpop.f32.mrb[21].mxu0 }
 0x144   :  { %v806_v33 = vmax.f32 %v778_v29, 0.0  ;;  %v1135_v34 = vadd.f32 %v1134_v14, %v1133_v31  ;;  %v1136_v35 = vpop.f32.mrb[22].mxu0  ;;  %v1176_v37 = vpop.f32.mrb[20].mxu1 }
 0x145   :  { %v1137_v36 = vpop.f32.mrb[23].mxu0  ;;  %v790_v41 = vpop.f32.mrb[21].mxu1 }
 0x146   :  { %v813_v38 = vpack.c.bf16 %v806_v33, %v805_v32  ;;  %v718_v39 = vadd.f32 %v1135_v34, %v653_v43  ;;  %v1138_v40 = vadd.f32 %v1137_v36, %v1136_v35  ;;  %v1177_v42 = vpop.f32.mrb[22].mxu1 }
 0x147   :  { %v793_v45 = vpop.f32.mrb[23].mxu1 }
 0x148   :  { %v783_v27 = vadd.f32 %v1172_v20, %v718_v39  ;;  %v721_v44 = vadd.f32 %v1138_v40, %v656_v46  ;;  %1194 = vmatprep.mubr.bf16.mxu0 %v813_v38 }
 0x14a   :  { %v786_v30 = vadd.f32 %v1173_v24, %v721_v44  ;;  %v1139_v47 = vpop.f32.mrb[24].mxu0  ;;  %v807_v49 = vmax.f32 %v783_v27, 0.0 }
 0x14b   :  { %v1140_v48 = vpop.f32.mrb[25].mxu0 }
 0x14c   :  { %v808_v50 = vmax.f32 %v786_v30, 0.0  ;;  %v1141_v51 = vadd.f32 %v1140_v48, %v1139_v47  ;;  %v1142_v52 = vpop.f32.mrb[26].mxu0 }
 0x14d   :  { %v1143_v53 = vpop.f32.mrb[27].mxu0 }
 0x14e   :  { %v814_v54 = vpack.c.bf16 %v808_v50, %v807_v49  ;;  %v1144_v55 = vadd.f32 %v1143_v53, %v1142_v52  ;;  %v726_v56 = vadd.f32 %v1141_v51, %v661_v59 }
 0x150   :  { %v791_v57 = vadd.f32 %v790_v41, %v726_v56  ;;  %1195 = vmatmul.mubr.bf16.vlgmr.msra.gmra.mrb[32].mxu0 %v814_v54  ;;  %v729_v43 = vadd.f32 %v1144_v55, %v664_v62  ;;  %v1022_v62 = vld [vmem:[%s1459_s4] ss:$0 sm:$0xff] }
 0x152   :  { %v794_v58 = vadd.f32 %v793_v45, %v729_v43  ;;  %v1145_v60 = vpop.f32.mrb[28].mxu0  ;;  %v809_v46 = vmax.f32 %v791_v57, 0.0 }
 0x153   :  { %v1146_v61 = vpop.f32.mrb[29].mxu0 }
 0x154   :  { %v810_v63 = vmax.f32 %v794_v58, 0.0  ;;  %v1147_v0 = vadd.f32 %v1146_v61, %v1145_v60  ;;  %v1148_v1 = vpop.f32.mrb[30].mxu0 }
 0x155   :  { %v1149_v2 = vpop.f32.mrb[31].mxu0 }
 0x156   :  { %v815_v3 = vpack.c.bf16 %v810_v63, %v809_v46  ;;  %v734_v4 = vadd.f32 %v1147_v0, %v669_v11  ;;  %v1150_v5 = vadd.f32 %v1149_v2, %v1148_v1 }
 0x158   :  { %v799_v6 = vadd.f32 %v1176_v37, %v734_v4  ;;  %v737_v7 = vadd.f32 %v1150_v5, %v672_v15  ;;  %1198 = vmatprep.mubr.bf16.mxu1 %v815_v3 }
 0x15a   :  { %v802_v8 = vadd.f32 %v1177_v42, %v737_v7  ;;  %v811_v9 = vmax.f32 %v799_v6, 0.0 }
 0x15c   :  { %v812_v59 = vmax.f32 %v802_v8, 0.0 }
 0x15e   :  { %v816_v10 = vpack.c.bf16 %v812_v59, %v811_v9 }
 0x160   :  { %1199 = vmatmul.mubr.bf16.vlgmr.msra.gmra.mrb[24].mxu1 %v816_v10 }
 0x223   :  { %v1196_v12 = vpop.f32.mrb[32].mxu0 }
 0x224   :  { %v931_v13 = vadd.f32 %v1196_v12, %v1022_v62  ;;  %v922_v16 = vpop.f32.mrb[33].mxu0 }
 0x225   :  { %v923_v17 = vadd.f32 %v1022_v62, %v922_v16  ;;  %v1197_v18 = vpop.f32.mrb[34].mxu0 }
 0x226   :  { %956 = vst.msk [vmem:[%s1460_s5 + $0x10] sm:$0xff] %vm953_vm1, %v931_v13  ;;  %v934_v11 = vadd.f32 %v1197_v18, %v1022_v62  ;;  %v925_v15 = vpop.f32.mrb[35].mxu0 }
 0x227   :  { %954 = vst.msk [vmem:[%s1460_s5] sm:$0xff] %vm953_vm1, %v923_v17  ;;  %v926_v19 = vadd.f32 %v1022_v62, %v925_v15 }
 0x228   :  { %957 = vst.msk [vmem:[%s1460_s5 + $0x18] sm:$0xff] %vm953_vm1, %v934_v11 }
 0x229   :  { %955 = vst.msk [vmem:[%s1460_s5 + $0x8] sm:$0xff] %vm953_vm1, %v926_v19 }
 0x233   :  { %v1200_v20 = vpop.f32.mrb[24].mxu1 }
 0x234   :  { %v947_v21 = vadd.f32 %v1200_v20, %v1022_v62  ;;  %v938_v22 = vpop.f32.mrb[25].mxu1 }
 0x235   :  { %v939_v23 = vadd.f32 %v1022_v62, %v938_v22  ;;  %v1201_v24 = vpop.f32.mrb[26].mxu1 }
 0x236   :  { %960 = vst.msk [vmem:[%s1460_s5 + $0x30] sm:$0xff] %vm953_vm1, %v947_v21  ;;  %v950_v25 = vadd.f32 %v1201_v24, %v1022_v62  ;;  %v941_v26 = vpop.f32.mrb[27].mxu1 }
 0x237   :  { %958 = vst.msk [vmem:[%s1460_s5 + $0x20] sm:$0xff] %vm953_vm1, %v939_v23  ;;  %v942_v28 = vadd.f32 %v1022_v62, %v941_v26 }
 0x238   :  { %961 = vst.msk [vmem:[%s1460_s5 + $0x38] sm:$0xff] %vm953_vm1, %v950_v25 }
 0x239   :  { %959 = vst.msk [vmem:[%s1460_s5 + $0x28] sm:$0xff] %vm953_vm1, %v942_v28 }
 0x23a   :  { %966 = vsyncpa [#allocation3], 1 }
 0x23b   :  { %967 = vsyncpa [#allocation5], 1 }

</bundles_post_ra>
